<compile_context>
chip_gen: v7x
topology: tpu7x:2x2x1
jax: 0.10.0
libtpu: 0.0.40
codegen_flags: <defaults>
</compile_context>

<pallas_src>
import math

import jax
import jax.numpy as jnp
from jax.experimental import pallas as pl
from jax.experimental.pallas import tpu as pltpu

# ---------------- problem sizes (small, consistent with the module) ----------
B = 2                       # batch (number of noise-level scalars)
NUM_CHANNELS = 256          # embedding width (multiple of 128 -> lane dense)
HALF = NUM_CHANNELS // 2    # number of fourier frequencies
SCALE = 16.0                # module default: freqs = randn(half) * scale

SUBLANE = 8
B_PAD = ((B + SUBLANE - 1) // SUBLANE) * SUBLANE   # pad batch to full sublanes
TWO_PI = 2.0 * math.pi


# ---------------------------- Pallas kernel ----------------------------------
def fourier_embedding_kernel(x_ref, freqs_ref, out_ref):
    # Outer product via broadcast: (B_PAD, 1) * (1, HALF) -> (B_PAD, HALF).
    # The 2*pi scaling of the freqs buffer happens in-kernel, matching
    # `x.ger((2 * np.pi * self.freqs).to(x.dtype))`.
    ang = x_ref[...] * (TWO_PI * freqs_ref[...])

    # torch.cat([cos, sin], dim=1): two aligned, unmasked 128-lane slabs.
    out_ref[:, :HALF] = jnp.cos(ang)
    out_ref[:, HALF:] = jnp.sin(ang)


# ------------------------------ wrapper ---------------------------------------
def fourier_embedding_forward(x, freqs):
    (b,) = x.shape
    assert freqs.shape == (HALF,)
    x32 = x.astype(jnp.float32)

    # layout glue only: pad batch to 8 sublanes, make freqs a (1, HALF) row
    x_col = jnp.zeros((B_PAD, 1), jnp.float32).at[:b, 0].set(x32)
    freqs_row = freqs.astype(jnp.float32).reshape(1, HALF)

    out = pl.pallas_call(
        fourier_embedding_kernel,
        out_shape=jax.ShapeDtypeStruct((B_PAD, NUM_CHANNELS), jnp.float32),
        grid=(1,),
        in_specs=[
            pl.BlockSpec((B_PAD, 1), lambda i: (0, 0)),      # noise levels
            pl.BlockSpec((1, HALF), lambda i: (0, 0)),       # freqs buffer
        ],
        out_specs=pl.BlockSpec((B_PAD, NUM_CHANNELS), lambda i: (0, 0)),
        compiler_params=pltpu.CompilerParams(
            dimension_semantics=("parallel",)),
    )(x_col, freqs_row)

    return out[:b]   # strip the sublane padding


# -------------------------- pure-JAX reference --------------------------------
def fourier_embedding_reference(x, freqs):
    ang = jnp.outer(x.astype(jnp.float32),
                    (TWO_PI * freqs).astype(jnp.float32))
    return jnp.concatenate([jnp.cos(ang), jnp.sin(ang)], axis=1)


# --------------------------------- main ---------------------------------------
if __name__ == "__main__":
    key = jax.random.PRNGKey(0)
    kf, kx = jax.random.split(key)

    # module buffer: freqs = randn(num_channels // 2) * scale
    freqs = jax.random.normal(kf, (HALF,), jnp.float32) * SCALE
    # conditioning inputs (e.g. c_noise = log(sigma)/4 in NCSN++), modest range
    x = jax.random.uniform(kx, (B,), jnp.float32, minval=-1.0, maxval=1.0)

    fwd = jax.jit(lambda xx: fourier_embedding_forward(xx, freqs))
    out = jax.block_until_ready(fwd(x))

    ref = fourier_embedding_reference(x, freqs)
    assert out.shape == (B, NUM_CHANNELS) and out.dtype == jnp.float32
    if not bool(jnp.allclose(out, ref, rtol=1e-3, atol=1e-3)):
        raise AssertionError(
            "mismatch vs reference, max abs err = "
            f"{float(jnp.max(jnp.abs(out - ref)))}")

    print("KERNEL_OK")
</pallas_src>

<mosaic_0001>
module attributes {stable_mosaic.version = 11 : i64} {
  func.func @fourier_embedding_kernel(%arg0: i32, %arg1: memref<8x1xf32, #tpu.memory_space<vmem>>, %arg2: memref<1x128xf32, #tpu.memory_space<vmem>>, %arg3: memref<8x256xf32, #tpu.memory_space<vmem>>) attributes {dimension_semantics = [#tpu.dimension_semantics<parallel>], iteration_bounds = array<i64: 1>, scalar_prefetch = 0 : i64, scratch_operands = 0 : i64, tpu.core_type = #tpu.core_type<tc>, window_params = [{pipeline_mode = #tpu.pipeline_mode<synchronous>, transform_indices = @transform_0, window_bounds = array<i64: 8, 1>}, {pipeline_mode = #tpu.pipeline_mode<synchronous>, transform_indices = @transform_1, window_bounds = array<i64: 1, 128>}, {pipeline_mode = #tpu.pipeline_mode<synchronous>, transform_indices = @transform_2, window_bounds = array<i64: 8, 256>}]} {
    %c0 = arith.constant 0 : index
    %c0_0 = arith.constant 0 : index
    %0 = vector.load %arg1[%c0, %c0_0] : memref<8x1xf32, #tpu.memory_space<vmem>>, vector<8x1xf32>
    %c0_1 = arith.constant 0 : index
    %c0_2 = arith.constant 0 : index
    %1 = vector.load %arg2[%c0_1, %c0_2] : memref<1x128xf32, #tpu.memory_space<vmem>>, vector<1x128xf32>
    %cst = arith.constant 6.28318548 : f32
    %2 = vector.broadcast %cst : f32 to vector<1x128xf32>
    %3 = arith.mulf %2, %1 : vector<1x128xf32>
    %4 = vector.broadcast %0 : vector<8x1xf32> to vector<8x128xf32>
    %5 = vector.broadcast %3 : vector<1x128xf32> to vector<8x128xf32>
    %6 = arith.mulf %4, %5 : vector<8x128xf32>
    %7 = math.cos %6 : vector<8x128xf32>
    %c0_3 = arith.constant 0 : index
    %c0_4 = arith.constant 0 : index
    %8 = vector.load %arg3[%c0_3, %c0_4] : memref<8x256xf32, #tpu.memory_space<vmem>>, vector<8x128xf32>
    tpu.vector_store %arg3[%c0_3, %c0_4], %7 {strides = array<i32>} : memref<8x256xf32, #tpu.memory_space<vmem>>, vector<8x128xf32>,
    %9 = math.sin %6 : vector<8x128xf32>
    %c0_5 = arith.constant 0 : index
    %c128 = arith.constant 128 : index
    %10 = vector.load %arg3[%c0_5, %c128] : memref<8x256xf32, #tpu.memory_space<vmem>>, vector<8x128xf32>
    tpu.vector_store %arg3[%c0_5, %c128], %9 {strides = array<i32>} : memref<8x256xf32, #tpu.memory_space<vmem>>, vector<8x128xf32>,
    return
  }
  func.func @transform_0(%arg0: i32) -> (i32, i32) {
    %c0_i32 = arith.constant 0 : i32
    %c0_i32_0 = arith.constant 0 : i32
    %c0_i32_1 = arith.constant 0 : i32
    return %c0_i32, %c0_i32_0 : i32, i32
  }
  func.func @transform_1(%arg0: i32) -> (i32, i32) {
    %c0_i32 = arith.constant 0 : i32
    %c0_i32_0 = arith.constant 0 : i32
    %c0_i32_1 = arith.constant 0 : i32
    return %c0_i32, %c0_i32_0 : i32, i32
  }
  func.func @transform_2(%arg0: i32) -> (i32, i32) {
    %c0_i32 = arith.constant 0 : i32
    %c0_i32_0 = arith.constant 0 : i32
    %c0_i32_1 = arith.constant 0 : i32
    return %c0_i32, %c0_i32_0 : i32, i32
  }
}

</mosaic_0001>

<bundles_post_ra>
// kernel: _lambda_.1
= control target key start
LH: loop header
LB: loop body
LE: loop exit
PB: predicated region body
PF: predicated region fallthrough
CT: control target
= control target key end

     0   :  { %v263_v0 = vmov 0   ;;  %v20_v2 = vlaneseq  ;;  %v264_v20 = vmov 683565275   ;;  %v265_v22 = vmov 2475754826   ;;  %s318_s0 = inlined_call_operand.vmem [shape: f32[8,1], index: 0, kind: input, shape index: {}]   ;;  %s319_s1 = inlined_call_operand.vmem [shape: f32[1,128], index: 1, kind: input, shape index: {}]   ;;  %s320_s2 = inlined_call_operand.vmem [shape: f32[8,256], index: 2, kind: output, shape index: {}]  }
   0x1   :  { %258 = vset.pattern.permute.xlu0 %v263_v0  ;;  %v11_v1 = vld [vmem:[%s318_s0] sm:$0xff]  ;;  %v266_v25 = vmov 2131351028   ;;  %v267_v28 = vmov 2102212464  }
   0x2   :  { %16 = vperm.xlu0 %258, %v11_v1   ;;  %v21_v3 = vshrl.u32 %v20_v2, 7  ;;  %v12_v4 = vld [vmem:[%s319_s1] sm:$0x1]  ;;  %v268_v31 = vmov 920167782  }
   0x3   :  { %v13_v5 = vmul.f32 6.2831855, %v12_v4  ;;  %v269_v34 = vmov 1326507024  }
   0x4   :  { %v22_v6 = vsub.s32 0, %v21_v3 }
   0x6   :  { %v23_v7 = vrot.slane %v13_v5, %v22_v6 }
  0x81   :  { %v17_v8 = vpop.permute.xlu0 %16 }
  0x82   :  { %v291_v9 = vmul.f32 %v23_v7, %v17_v8 }
  0x84   :  { %v29_v10 = vand.u32 2139095040, %v291_v9  ;;  %v26_v14 = vand.u32 2147483647, %v291_v9  ;;  %vm28_vm7 = vcmp.lt.s32.totalorder %v291_v9, 0  ;;  %vm118_vm15 = vweird.f32 %v291_v9 }
  0x86   :  { %v30_v11 = vshrl.u32 %v29_v10, 23  ;;  %v33_v17 = vand.u32 8388607, %v26_v14  ;;  %vm27_vm8 = vcmp.le.f32.partialorder %v26_v14, 0.7853982 }
  0x88   :  { %v239_v12 = vadd.s32 4294967169, %v30_v11  ;;  %v34_v36 = vor.u32 8388608, %v33_v17 }
  0x8a   :  { %v36_v13 = vadd.s32 1, %v239_v12  ;;  %v74_v50 = vshll.u32 %v34_v36, 8 }
  0x8c   :  { %vm37_vm0 = vcmp.gt.s32.totalorder %v36_v13, 0 }
  0x8d   :  { %v38_v15 = vsel %vm37_vm0, %v36_v13, 0 }
  0x8e   :  { %v40_v16 = vand.u32 31, %v38_v15  ;;  %v39_v19 = vshrl.u32 %v38_v15, 5 }
  0x90   :  { %v41_v18 = vsub.s32 32, %v40_v16  ;;  %v43_v21 = vshll.u32 %v264_v20, %v40_v16  ;;  %v46_v23 = vshll.u32 %v265_v22, %v40_v16  ;;  %v49_v27 = vshll.u32 %v266_v25, %v40_v16 }
  0x91   :  { %v52_v30 = vshll.u32 %v267_v28, %v40_v16  ;;  %v55_v33 = vshll.u32 %v268_v31, %v40_v16  ;;  %vm58_vm1 = vcmp.lt.s32.totalorder %v39_v19, 1  ;;  %vm61_vm2 = vcmp.lt.s32.totalorder %v39_v19, 4 }
  0x92   :  { %v44_v24 = vshrl.u32 %v265_v22, %v41_v18  ;;  %v47_v26 = vshrl.u32 %v266_v25, %v41_v18  ;;  %v50_v29 = vshrl.u32 %v267_v28, %v41_v18  ;;  %v53_v32 = vshrl.u32 %v268_v31, %v41_v18 }
  0x93   :  { %v56_v35 = vshrl.u32 %v269_v34, %v41_v18  ;;  %v42_v45 = vshrl.u32 %v264_v20, %v41_v18  ;;  %vm60_vm3 = vcmp.lt.s32.totalorder %v39_v19, 3  ;;  %vm59_vm4 = vcmp.lt.s32.totalorder %v39_v19, 2 }
  0x94   :  { %v45_v37 = vor.u32 %v44_v24, %v43_v21  ;;  %v48_v38 = vor.u32 %v47_v26, %v46_v23  ;;  %v51_v39 = vor.u32 %v50_v29, %v49_v27  ;;  %v54_v40 = vor.u32 %v53_v32, %v52_v30 }
  0x95   :  { %v57_v41 = vor.u32 %v56_v35, %v55_v33 }
  0x96   :  { %v63_v42 = vsel %vm61_vm2, %v51_v39, 2102212464  ;;  %v66_v43 = vsel %vm58_vm1, %v45_v37, %v48_v38  ;;  %v70_v44 = vsel %vm58_vm1, %v48_v38, %v51_v39  ;;  %v67_v46 = vsel %vm61_vm2, %v54_v40, 920167782 }
  0x97   :  { %v71_v47 = vsel %vm61_vm2, %v57_v41, 1326507024  ;;  %v68_v48 = vsel %vm60_vm3, %v51_v39, %v67_v46  ;;  %v62_v51 = vsel %vm58_vm1, %v42_v45, %v45_v37  ;;  %v64_v52 = vsel %vm60_vm3, %v48_v38, %v63_v42 }
  0x98   :  { %v72_v49 = vsel %vm60_vm3, %v54_v40, %v71_v47  ;;  %v69_v53 = vsel %vm59_vm4, %v66_v43, %v68_v48  ;;  %v65_v59 = vsel %vm59_vm4, %v62_v51, %v64_v52 }
  0x99   :  { %v73_v54 = vsel %vm59_vm4, %v70_v44, %v72_v49  ;;  %v300_v57 = vmul.u32.u64.low %v74_v50, %v69_v53  ;;  %v301_v58 = vmul.u32.u64.high %v74_v50, %v69_v53, %v300_v57  ;;  %v81_v61 = vmul.u32 %v74_v50, %v65_v59 }
  0x9a   :  { %v297_v55 = vmul.u32.u64.low %v74_v50, %v73_v54  ;;  %v298_v56 = vmul.u32.u64.high %v74_v50, %v73_v54, %v297_v55 }
  0x9b   :  { %v84_v60 = vadd.s32 1, %v301_v58 }
  0x9c   :  { %vm83_vm5 = vc.u32 %v298_v56, %v300_v57  ;;  %v82_v10 = vadd.s32 %v300_v57, %v298_v56 }
  0x9d   :  { %v85_v62 = vsel %vm83_vm5, %v84_v60, %v301_v58 }
  0x9e   :  { %v86_v63 = vadd.s32 %v85_v62, %v81_v61 }
  0xa0   :  { %v87_v0 = vadd.s32 536870912, %v86_v63 }
  0xa2   :  { %v88_v1 = vshrl.u32 %v87_v0, 30 }
  0xa4   :  { %v89_v2 = vshll.u32 %v88_v1, 30  ;;  %v112_v23 = vsub.s32 4, %v88_v1 }
  0xa6   :  { %v90_v3 = vsub.s32 %v86_v63, %v89_v2  ;;  %v113_v26 = vsel %vm28_vm7, %v112_v23, %v88_v1 }
  0xa7   :  { %v115_v28 = vsel %vm27_vm8, 0, %v113_v26 }
  0xa8   :  { %v92_v4 = vsub.s32 0, %v90_v3  ;;  %v223_v29 = vadd.s32 3, %v115_v28  ;;  %v119_v30 = vand.u32 3, %v115_v28 }
  0xaa   :  { %v240_v5 = vmin.u32 %v92_v4, %v90_v3  ;;  %v224_v31 = vand.u32 3, %v223_v29  ;;  %vm124_vm9 = vcmp.eq.s32.totalorder %v119_v30, 2  ;;  %vm121_vm11 = vcmp.eq.s32.totalorder %v119_v30, 0 }
  0xab   :  { %vm120_vm13 = vcmp.lt.s32.totalorder %v119_v30, 2 }
  0xac   :  { %v94_v6 = vclz %v240_v5  ;;  %vm229_vm10 = vcmp.eq.s32.totalorder %v224_v31, 2  ;;  %vm226_vm12 = vcmp.eq.s32.totalorder %v224_v31, 0  ;;  %vm225_vm14 = vcmp.lt.s32.totalorder %v224_v31, 2 }
  0xae   :  { %v241_v7 = vadd.s32 4294967294, %v94_v6 }
  0xb0   :  { %vm242_vm6 = vcmp.lt.s32.totalorder %v241_v7, 0 }
  0xb1   :  { %v97_v8 = vsel %vm242_vm6, 0, %v241_v7 }
  0xb2   :  { %v98_v11 = vsub.s32 32, %v97_v8  ;;  %v102_v12 = vsub.s32 4294967266, %v97_v8  ;;  %v99_v13 = vshll.u32 %v90_v3, %v97_v8 }
  0xb4   :  { %v100_v15 = vshrl.u32 %v82_v10, %v98_v11  ;;  %v103_v16 = vadd.s32 127, %v102_v12 }
  0xb6   :  { %v101_v17 = vor.u32 %v100_v15, %v99_v13  ;;  %v104_v18 = vshll.u32 %v103_v16, 23 }
  0xb8   :  { %v105_v19 = vor.u32 4788187, %v104_v18  ;;  %v108_v21 = vcvt.s32.f32 %v101_v17 }
  0xba   :  { %v106_v20 = vand.u32 2147483647, %v105_v19 }
  0xbc   :  { %v109_v22 = vmul.f32 %v108_v21, %v106_v20 }
  0xbe   :  { %v110_v24 = vxor.u32 2147483648, %v109_v22 }
  0xc0   :  { %v111_v25 = vsel %vm28_vm7, %v110_v24, %v109_v22 }
  0xc1   :  { %v114_v27 = vsel %vm27_vm8, %v291_v9, %v111_v25 }
  0xc2   :  { %259 = vcosq.f32 %v114_v27 }
  0xc3   :  { %261 = vsinq.f32 %v114_v27 }
  0xcc   :  { %v260_v32 = vpop.eup %259 }
  0xcd   :  { %v262_v33 = vpop.eup %261  ;;  %v125_v34 = vxor.u32 2147483648, %v260_v32 }
  0xce   :  { %v122_v35 = vxor.u32 2147483648, %v262_v33 }
  0xcf   :  { %v126_v36 = vsel %vm124_vm9, %v125_v34, %v262_v33  ;;  %v231_v14 = vsel %vm229_vm10, %v125_v34, %v262_v33 }
  0xd0   :  { %v123_v37 = vsel %vm121_vm11, %v260_v32, %v122_v35  ;;  %v228_v38 = vsel %vm226_vm12, %v260_v32, %v122_v35 }
  0xd1   :  { %v127_v39 = vsel %vm120_vm13, %v123_v37, %v126_v36  ;;  %v232_v40 = vsel %vm225_vm14, %v228_v38, %v231_v14 }
  0xd2   :  { %v128_v41 = vsel %vm118_vm15, nan, %v127_v39  ;;  %v233_v42 = vsel %vm118_vm15, nan, %v232_v40 }
  0xd3   :  { %129 = vst [vmem:[%s320_s2] sm:$0xff] %v128_v41  ;;  %234 = vst [vmem:[%s320_s2 + $0x8] sm:$0xff] %v233_v42 }

</bundles_post_ra>
